<compile_context>
chip_gen: v7x
topology: tpu7x:2x2x1
jax: 0.10.0
libtpu: 0.0.40
codegen_flags: <defaults>
</compile_context>

<pallas_src>
import jax
import jax.numpy as jnp
from jax.experimental import pallas as pl
from jax.experimental.pallas import tpu as pltpu


def _round_up(x, m):
    return ((x + m - 1) // m) * m


# ------------------------------ Pallas kernel -------------------------------

def _pixel_classifier_kernel(x_ref, w_ref, b_ref, o_ref):
    # x: (1, Cin, THW) f32, w: (Cout, Cin) f32, b: (Cout, 1) f32
    # out[0] = W @ x[0] + b  -> (Cout, THW); HW axis stays lane-dense.
    o_ref[0] = (jnp.dot(w_ref[...], x_ref[0],
                        preferred_element_type=jnp.float32)
                + b_ref[...])


# --------------------------------- wrapper ----------------------------------

def pixel_classifier_forward(params, x_nchw):
    """1x1 Conv2d(in_channels -> num_classes, bias=True); NCHW in, NCHW out."""
    w, b = params["w"], params["b"]              # w: (Cout, Cin), b: (Cout,)
    cout, cin = w.shape
    n, c, h, wd = x_nchw.shape
    assert c == cin

    hw = h * wd
    # Free contiguous reshape: NCHW -> (N, Cin, HW).
    x3 = x_nchw.reshape(n, cin, hw)

    # HW tile: lane-dense (multiple of 128), large so grid-step overhead is
    # negligible, small enough that double-buffered in+out blocks stay far
    # below the scoped-VMEM default on every generation (v5e/v6e/v7x).
    thw = min(2048, _round_up(hw, 128))
    hwp = _round_up(hw, thw)
    if hwp != hw:
        x3 = jnp.pad(x3, ((0, 0), (0, 0), (0, hwp - hw)))

    b2 = b.reshape(cout, 1)                      # broadcasts over HW lanes

    flops = 2 * n * cout * cin * hwp
    bytes_accessed = 4 * (n * cin * hwp + cout * cin + cout + n * cout * hwp)

    out = pl.pallas_call(
        _pixel_classifier_kernel,
        out_shape=jax.ShapeDtypeStruct((n, cout, hwp), jnp.float32),
        grid=(n, hwp // thw),
        in_specs=[
            pl.BlockSpec((1, cin, thw), lambda i, j: (i, 0, j)),
            pl.BlockSpec((cout, cin), lambda i, j: (0, 0)),   # resident W
            pl.BlockSpec((cout, 1), lambda i, j: (0, 0)),     # resident bias
        ],
        out_specs=pl.BlockSpec((1, cout, thw), lambda i, j: (i, 0, j)),
        compiler_params=pltpu.CompilerParams(
            dimension_semantics=("parallel", "parallel"),
        ),
        cost_estimate=pl.CostEstimate(flops=flops, transcendentals=0,
                                      bytes_accessed=bytes_accessed),
    )(x3, w, b2)

    if hwp != hw:
        out = out[:, :, :hw]
    return out.reshape(n, cout, h, wd)           # free contiguous reshape


# ----------------------------- parameter setup ------------------------------

def make_params(key, in_channels, num_classes):
    # mirror PyTorch Conv2d default init scale (uniform +/- 1/sqrt(fan_in))
    kw, kb = jax.random.split(key)
    bound = (1.0 / in_channels) ** 0.5
    w = jax.random.uniform(kw, (num_classes, in_channels), jnp.float32,
                           -bound, bound)
    b = jax.random.uniform(kb, (num_classes,), jnp.float32, -bound, bound)
    return {"w": w, "b": b}


# ------------------------------------ main -----------------------------------

if __name__ == "__main__":
    key = jax.random.PRNGKey(0)
    kx, kp = jax.random.split(key)

    in_channels, num_classes = 4, 5
    x = jax.random.normal(kx, (2, in_channels, 16, 16), jnp.float32)  # NCHW
    params = make_params(kp, in_channels, num_classes)

    out = jax.jit(pixel_classifier_forward)(params, x)
    jax.block_until_ready(out)

    # plain-JAX reference (f32): per-pixel linear layer == 1x1 conv
    ref = (jnp.einsum("nchw,oc->nohw", x, params["w"])
           + params["b"][None, :, None, None])

    assert out.shape == (2, num_classes, 16, 16), out.shape
    assert bool(jnp.all(jnp.isfinite(out)))
    # f32 operands + f32 accumulation -> tight tolerance
    assert bool(jnp.allclose(out, ref, atol=1e-5, rtol=1e-5)), float(
        jnp.max(jnp.abs(out - ref)))
    print("KERNEL_OK")
</pallas_src>

<mosaic_0001>
module attributes {stable_mosaic.version = 11 : i64} {
  func.func @_pixel_classifier_kernel(%arg0: i32, %arg1: i32, %arg2: memref<1x4x256xf32, #tpu.memory_space<vmem>>, %arg3: memref<5x4xf32, #tpu.memory_space<vmem>>, %arg4: memref<5x1xf32, #tpu.memory_space<vmem>>, %arg5: memref<1x5x256xf32, #tpu.memory_space<vmem>>) attributes {dimension_semantics = [#tpu.dimension_semantics<parallel>, #tpu.dimension_semantics<parallel>], iteration_bounds = array<i64: 2, 1>, scalar_prefetch = 0 : i64, scratch_operands = 0 : i64, tpu.core_type = #tpu.core_type<tc>, window_params = [{transform_indices = @transform_0, window_bounds = array<i64: 1, 4, 256>}, {pipeline_mode = #tpu.pipeline_mode<synchronous>, transform_indices = @transform_1, window_bounds = array<i64: 5, 4>}, {pipeline_mode = #tpu.pipeline_mode<synchronous>, transform_indices = @transform_2, window_bounds = array<i64: 5, 1>}, {transform_indices = @transform_3, window_bounds = array<i64: 1, 5, 256>}]} {
    %c0 = arith.constant 0 : index
    %c0_0 = arith.constant 0 : index
    %0 = vector.load %arg3[%c0, %c0_0] : memref<5x4xf32, #tpu.memory_space<vmem>>, vector<5x4xf32>
    %c0_1 = arith.constant 0 : index
    %c0_2 = arith.constant 0 : index
    %c0_3 = arith.constant 0 : index
    %1 = vector.load %arg2[%c0_1, %c0_2, %c0_3] : memref<1x4x256xf32, #tpu.memory_space<vmem>>, vector<1x4x256xf32>
    %2 = vector.shape_cast %1 : vector<1x4x256xf32> to vector<4x256xf32>
    %cst = arith.constant dense<0.000000e+00> : vector<5x256xf32>
    %3 = tpu.matmul %0, %2, %cst {dimension_numbers = #tpu.dot_dimension_numbers<[1], [0], [0], [1], [0, 0, 1, 1], [], []>} : vector<5x4xf32>, vector<4x256xf32>, vector<5x256xf32> -> vector<5x256xf32>
    %c0_4 = arith.constant 0 : index
    %c0_5 = arith.constant 0 : index
    %4 = vector.load %arg4[%c0_4, %c0_5] : memref<5x1xf32, #tpu.memory_space<vmem>>, vector<5x1xf32>
    %5 = vector.broadcast %4 : vector<5x1xf32> to vector<5x256xf32>
    %6 = arith.addf %3, %5 : vector<5x256xf32>
    %c0_6 = arith.constant 0 : index
    %c0_7 = arith.constant 0 : index
    %c0_8 = arith.constant 0 : index
    %7 = vector.load %arg5[%c0_6, %c0_7, %c0_8] : memref<1x5x256xf32, #tpu.memory_space<vmem>>, vector<1x5x256xf32>
    %8 = vector.shape_cast %7 : vector<1x5x256xf32> to vector<5x256xf32>
    %9 = vector.shape_cast %6 : vector<5x256xf32> to vector<1x5x256xf32>
    tpu.vector_store %arg5[%c0_6, %c0_7, %c0_8], %9 {strides = array<i32>} : memref<1x5x256xf32, #tpu.memory_space<vmem>>, vector<1x5x256xf32>,
    return
  }
  func.func @transform_0(%arg0: i32, %arg1: i32) -> (i32, i32, i32) {
    %c0_i32 = arith.constant 0 : i32
    %c0_i32_0 = arith.constant 0 : i32
    return %arg0, %c0_i32, %arg1 : i32, i32, i32
  }
  func.func @transform_1(%arg0: i32, %arg1: i32) -> (i32, i32) {
    %c0_i32 = arith.constant 0 : i32
    %c0_i32_0 = arith.constant 0 : i32
    %c0_i32_1 = arith.constant 0 : i32
    return %c0_i32, %c0_i32_0 : i32, i32
  }
  func.func @transform_2(%arg0: i32, %arg1: i32) -> (i32, i32) {
    %c0_i32 = arith.constant 0 : i32
    %c0_i32_0 = arith.constant 0 : i32
    %c0_i32_1 = arith.constant 0 : i32
    return %c0_i32, %c0_i32_0 : i32, i32
  }
  func.func @transform_3(%arg0: i32, %arg1: i32) -> (i32, i32, i32) {
    %c0_i32 = arith.constant 0 : i32
    %c0_i32_0 = arith.constant 0 : i32
    return %arg0, %c0_i32, %arg1 : i32, i32, i32
  }
}

</mosaic_0001>

<bundles_post_ra>
// kernel: pixel_classifier_forward.1
= control target key start
LH: loop header
LB: loop body
LE: loop exit
PB: predicated region body
PF: predicated region fallthrough
CT: control target
= control target key end

     0   :  { %s479_s12 = smov 0   ;;  %s481_s13 = smov 0   ;;  %s518_s0 = inlined_call_operand.vmem [shape: f32[2,4,256], index: 0, kind: input, shape index: {}]   ;;  %s519_s1 = inlined_call_operand.vmem [shape: f32[5,4], index: 1, kind: input, shape index: {}]   ;;  %s520_s2 = inlined_call_operand.vmem [shape: f32[5,1], index: 2, kind: input, shape index: {}]   ;;  %s521_s3 = inlined_call_operand.vmem [shape: f32[2,5,256], index: 3, kind: output, shape index: {}]  }
   0x1   :  { %s483_s14 = smov 0  }
   0x2 LB: > { %s25_s15 = sadd.s32 1, %s451_s13  ;;  %p393_p0 = scmp.ge.s32.totalorder %s455_s14, 1  ;;  %s455_s14 = sphi %s483_s14, %s13_s14   ;;  %s451_s13 = sphi %s481_s13, %s523_s13   ;;  %s447_s12 = sphi %s479_s12, %s522_s12  }
   0x3   : > { %p27_p1 = scmp.ge.s32.totalorder %s25_s15, 2  ;;  %p158_p2 = scmp.lt.s32.totalorder %s455_s14, 3 }
   0x5   : > { %s525_s15 = smov (%p27_p1, %s25_s15), 0  ;;  %p159_p3 = pnand %p393_p0, %p158_p2 }
   0x6   : > { %p191_p4 = scmp.lt.s32.totalorder (!%p159_p3), %s447_s12, 1  ;;  %v457_v0 = vmov (!%p159_p3), 0.0   ;;  %v212_v1 = vld [vmem:[%s520_s2] sm:$0x1f] (!%p159_p3)  ;;  %v458_v2 = vmov (!%p159_p3), 0   ;;  %vm224_vm0 = vcmask (!%p159_p3), 1043456  }
   0x7   : > { %162 = sbr.rel (%p159_p3) target bundleno = 238 (0xee), region = 32  ;;  %293 = vmatprep.mubr.f32.mxu0 (!%p159_p3), %v457_v0  ;;  %431 = vset.pattern.permute.xlu0 (!%p159_p3), %v458_v2  ;;  %v210_v5 = vld [vmem:[%s519_s1] sm:$0x1f] (!%p159_p3)  ;;  %vm220_vm1 = vcmask (!%p159_p3), 31744  }
   0x8   : > { %215 = vperm.xlu0 (!%p159_p3), %431, %v212_v1  }
   0xe   : > { %s527_s12 = smov (!%p191_p4, %s447_s12), 1 }
   0xf   : > { %s403_s18 = sshll.u32 %s527_s12, 3  ;;  %s404_s24 = sshll.u32 %s527_s12, 4 }
  0x10   : > { %s198_s21 = scalar_lea.vmem %s518_s0, %s403_s18  ;;  %s208_s27 = scalar_lea.vmem %s521_s3, %s404_s24 }
  0x11   : > { %v211_v3 = vld [vmem:[%s198_s21] sm:$0xff] }
  0x12   : > { %v219_v4 = vcombine.high %v211_v3, %v211_v3 }
  0x14   : > { %398 = vmatprep.subr.msk.mxu0 %vm224_vm0, %v219_v4 }
  0x15   : > { %399 = vmatpush1.msk.msra.mxu0 %vm224_vm0, %v211_v3 }
  0x16   : > { %400 = vmatmul.mubr.msk.f32.vlgmr.msra.gmra.mrb[0].mxu0 %vm220_vm1, %v210_v5 }
  0x87   : > { %v216_v6 = vpop.permute.xlu0 %215 }
  0xe9   : > { %v295_v7 = vpop.f32.mrb[0].mxu0 }
  0xea   : > { %v296_v8 = vadd.f32 %v295_v7, %v216_v6  ;;  %v297_v9 = vpop.f32.mrb[1].mxu0 }
  0xeb   : > { %v298_v10 = vadd.f32 %v297_v9, %v216_v6 }
  0xec   : > { %300 = vst [vmem:[%s208_s27] sm:$0x1f] %v296_v8 }
  0xed   : > { %301 = vst [vmem:[%s208_s27 + $0x8] sm:$0x1f] %v298_v10 }
  0xee PF: > { %s13_s14 = sadd.s32 1, %s455_s14   ;;  %s522_s12 = smov %s451_s13 }
  0xef   : > { %p10_p5 = scmp.ge.s32.totalorder %s13_s14, 4   ;;  %s523_s13 = smov %s525_s15 }
  0xf1   :  { %12 = sbr.rel (!%p10_p5) target bundleno = 2 (0x2), region = 62 }

</bundles_post_ra>
